<compile_context>
chip_gen: v7x
topology: tpu7x:2x2x1
jax: 0.10.0
libtpu: 0.0.40
codegen_flags: <defaults>
</compile_context>

<pallas_src>
import functools

import jax
import jax.numpy as jnp
from jax.experimental import pallas as pl
from jax.experimental.pallas import tpu as pltpu


def _gat_fused_kernel(x_ref, adj_ref, wcat_ref, ascore_ref, wout_ref, aout_ref,
                      o_ref, *, alpha, nhid, nheads, nclass):
    """Fused 2-layer GAT forward for a block of TB batch elements.

    x_ref:      (TB, N, Fin)           node features (also the residual input)
    adj_ref:    (TB, N, N) int8        adjacency (>0 means edge)
    wcat_ref:   (Fin, H*nhid)          stacked head projections
    ascore_ref: (H*nhid, 2*H)          block-diagonal [src | dst] score matrix
    wout_ref:   (H*nhid, nclass)       output-layer projection
    aout_ref:   (1, 2*nclass)          output-layer attention vector
    o_ref:      (TB, N, nclass)        final output
    """
    TB, N, Fin = x_ref.shape
    HF = nheads * nhid
    neg_big = jnp.float32(-9e15)

    # Adjacency bias computed ONCE per block, reused by all nheads+1 softmaxes.
    adjf = adj_ref[...].astype(jnp.float32)                    # int8 -> f32
    adj_bias = jnp.where(adjf > 0, jnp.float32(0.0), neg_big)  # (TB, N, N)

    def elu(v):
        # NOTE: exp(v) - 1 (vs expm1) — matches the previously validated path.
        return jnp.where(v > 0, v, jnp.exp(v) - 1.0)

    def masked_softmax_matmul(f_src, f_dst, h_bf16):
        # f_src: (TB, N, 1), f_dst: (TB, 1, N), h_bf16: (TB, N, F)
        e = f_src + f_dst                                      # (TB, N, N)
        e = jnp.where(e > 0, e, alpha * e)                     # LeakyReLU(alpha)
        e = e + adj_bias                                       # hoisted mask
        e = e - jnp.max(e, axis=-1, keepdims=True)
        p = jnp.exp(e)
        denom = jnp.sum(p, axis=-1, keepdims=True)
        p = p * pl.reciprocal(denom, approx=True)              # EUP, not VALU div
        return jnp.einsum('bij,bjk->bik', p.astype(jnp.bfloat16), h_bf16,
                          preferred_element_type=jnp.float32)

    # ---- layer 1: shared projection for all heads (one bf16 MXU matmul) -----
    x2d = x_ref[...].reshape(TB * N, Fin).astype(jnp.bfloat16)
    h_all = jnp.dot(x2d, wcat_ref[...].astype(jnp.bfloat16),
                    preferred_element_type=jnp.float32)        # (TB*N, HF) f32
    h_all_bf16 = h_all.astype(jnp.bfloat16)

    # All-head attention scores in ONE lane-dense matmul against the
    # block-diagonal (HF, 2H) matrix: columns = [src_0..src_{H-1}, dst_0..].
    scores = jnp.dot(h_all_bf16, ascore_ref[...].astype(jnp.bfloat16),
                     preferred_element_type=jnp.float32)       # (TB*N, 2H)
    scores = scores.reshape(TB, N, 2 * nheads)
    h_all_bf16 = h_all_bf16.reshape(TB, N, HF)

    # ---- per-head attention; layer-2 projection accumulated in the loop -----
    # TODO(synk): for large nheads switch the static unroll to lax.fori_loop.
    wout = wout_ref[...].astype(jnp.bfloat16)                  # (HF, nclass)
    h2 = None
    for hh in range(nheads):
        h_head = h_all_bf16[:, :, hh * nhid:(hh + 1) * nhid]   # (TB, N, nhid)
        f_src = scores[:, :, hh:hh + 1]                        # (TB, N, 1)
        f_dst = scores[:, :, nheads + hh][:, None, :]          # (TB, 1, N)
        head_out = elu(masked_softmax_matmul(f_src, f_dst, h_head))
        contrib = jnp.dot(
            head_out.astype(jnp.bfloat16).reshape(TB * N, nhid),
            wout[hh * nhid:(hh + 1) * nhid, :],
            preferred_element_type=jnp.float32).reshape(TB, N, nclass)
        h2 = contrib if h2 is None else h2 + contrib

    # ---- layer 2: out_att (concat=False) + outer F.elu + fused residual -----
    aout = aout_ref[...]                                       # (1, 2*nclass)
    f_src2 = jnp.sum(h2 * aout[:, :nclass], axis=-1, keepdims=True)  # (TB,N,1)
    f_dst2 = jnp.sum(h2 * aout[:, nclass:], axis=-1)[:, None, :]     # (TB,1,N)
    out = masked_softmax_matmul(f_src2, f_dst2, h2.astype(jnp.bfloat16))
    out = elu(out)                                             # outer F.elu
    # Residual: re-read x here (instead of holding it live across the head
    # loop) to shorten the (TB, N, Fin) live range.
    out = out + x_ref[...].astype(jnp.float32)
    o_ref[...] = out.astype(o_ref.dtype)


def _pick_batch_block(B, N, nfeat, nheads, nhid, nclass, vmem_budget):
    """Largest TB that fits the VMEM budget AND leaves >= ~4 grid steps."""
    per_b = (2 * N * N * 1              # adj int8, double-buffered input
             + 2 * N * nfeat * 4        # x, double-buffered input
             + 2 * N * nclass * 4       # out, double-buffered output
             + N * nheads * nhid * 4    # h_all / h_all_bf16
             + 3 * N * N * 4            # adj_bias + e/p temporaries
             + 2 * N * nclass * 4)      # h2 accumulator + out value
    tb_vmem = max(1, vmem_budget // per_b)
    target_steps = 4 if B >= 4 else 2   # pipelining + both v7x TensorCores
    tb_steps = max(1, B // target_steps)
    tb = int(max(1, min(tb_vmem, tb_steps, B)))
    while B % tb != 0:
        tb -= 1
    return tb


def gat_forward(x, adj, params, *, alpha, batch_block=None):
    """Full GAT.forward (nlayers=2, eval mode) as one pallas_call."""
    B, N, nfeat = x.shape
    heads = params["heads"]
    nheads = len(heads)
    nhid = heads[0][0].shape[1]
    W_out, a_out = params["out"]
    nclass = W_out.shape[1]
    assert nclass == nfeat, "residual `out + input` requires nclass == nfeat"
    HF = nheads * nhid
    # TODO(synk): for real workloads pad N (and ideally H*nhid) to multiples of
    # 128 for lane-dense layouts; toy shapes below are left unpadded.

    # Pack per-head parameters so the kernel reads each in a single DMA.
    W_cat = jnp.concatenate([w for (w, _) in heads], axis=1)    # (nfeat, HF)
    # Block-diagonal score matrix: scores = h_all @ A_score gives every head's
    # src/dst attention scores in one lane-dense MXU matmul.
    A_score = jnp.zeros((HF, 2 * nheads), jnp.float32)
    for hh, (_, a) in enumerate(heads):
        a_vec = a[:, 0]
        A_score = A_score.at[hh * nhid:(hh + 1) * nhid, hh].set(a_vec[:nhid])
        A_score = A_score.at[hh * nhid:(hh + 1) * nhid,
                             nheads + hh].set(a_vec[nhid:])
    a_out2 = a_out.reshape(1, 2 * nclass)                       # lane-dense

    # adj as int8: 4x less HBM DMA traffic & double-buffered VMEM than f32.
    adj_i8 = adj if adj.dtype == jnp.int8 else (adj > 0).astype(jnp.int8)

    # VMEM-budgeted batch tile + explicit vmem limit.
    try:
        vmem_cap = pltpu.get_tpu_info().vmem_capacity_bytes
    except Exception:
        vmem_cap = 64 * 1024 * 1024
    vmem_limit = int(min(vmem_cap * 3 // 4, 100 * 1024 * 1024))
    if batch_block is None:
        TB = _pick_batch_block(B, N, nfeat, nheads, nhid, nclass,
                               vmem_limit // 2)
    else:
        TB = min(batch_block, B)
    assert B % TB == 0
    grid = (B // TB,)

    flops = int(2 * B * N * nfeat * HF                 # x @ W_cat
                + 2 * B * N * HF * 2 * nheads          # score matmul
                + nheads * (2 * B * N * N * nhid       # p @ h per head
                            + 2 * B * N * nhid * nclass)   # += @ W_out slice
                + 2 * B * N * N * nclass               # out-layer p @ h2
                + 4 * B * N * nclass)                  # out-layer scores
    transcendentals = int((nheads + 1) * B * N * N + B * N * (HF + nclass))
    bytes_accessed = int(x.size * 4 + adj_i8.size + B * N * nclass * 4
                         + (W_cat.size + A_score.size + W_out.size
                            + a_out2.size) * 4)

    kern = functools.partial(_gat_fused_kernel, alpha=alpha, nhid=nhid,
                             nheads=nheads, nclass=nclass)
    return pl.pallas_call(
        kern,
        out_shape=jax.ShapeDtypeStruct((B, N, nclass), x.dtype),
        grid=grid,
        in_specs=[
            pl.BlockSpec((TB, N, nfeat), lambda b: (b, 0, 0)),
            pl.BlockSpec((TB, N, N), lambda b: (b, 0, 0)),
            pl.BlockSpec((nfeat, HF), lambda b: (0, 0)),
            pl.BlockSpec((HF, 2 * nheads), lambda b: (0, 0)),
            pl.BlockSpec((HF, nclass), lambda b: (0, 0)),
            pl.BlockSpec((1, 2 * nclass), lambda b: (0, 0)),
        ],
        out_specs=pl.BlockSpec((TB, N, nclass), lambda b: (b, 0, 0)),
        compiler_params=pltpu.CompilerParams(
            dimension_semantics=("parallel",),
            vmem_limit_bytes=vmem_limit),
        cost_estimate=pl.CostEstimate(flops=flops,
                                      transcendentals=transcendentals,
                                      bytes_accessed=bytes_accessed),
    )(x, adj_i8, W_cat, A_score, W_out, a_out2)


def _xavier_uniform(key, shape, gain=1.414):
    fan_in, fan_out = shape
    limit = gain * (6.0 / (fan_in + fan_out)) ** 0.5
    return jax.random.uniform(key, shape, jnp.float32, -limit, limit)


def init_gat_params(key, nfeat, nhid, nclass, nheads):
    """Deterministic xavier_uniform(gain=1.414) init, matching the module."""
    params = {"heads": []}
    for _ in range(nheads):
        key, k1, k2 = jax.random.split(key, 3)
        params["heads"].append(
            (_xavier_uniform(k1, (nfeat, nhid)),
             _xavier_uniform(k2, (2 * nhid, 1))))
    key, k1, k2 = jax.random.split(key, 3)
    params["out"] = (_xavier_uniform(k1, (nhid * nheads, nclass)),
                     _xavier_uniform(k2, (2 * nclass, 1)))
    return params


def _gat_reference(x, adj, params, alpha):
    """Pure-JAX f32 reference of GAT.forward (eval mode, nlayers=2)."""
    def layer(inp, W, a, concat):
        h = jnp.einsum('bnf,fo->bno', inp, W)
        F_out = W.shape[1]
        f_src = jnp.einsum('bno,o->bn', h, a[:F_out, 0])[:, :, None]
        f_dst = jnp.einsum('bno,o->bn', h, a[F_out:, 0])[:, None, :]
        e = f_src + f_dst
        e = jnp.where(e > 0, e, alpha * e)
        e = jnp.where(adj > 0, e, -9e15)
        p = jax.nn.softmax(e, axis=-1)
        hp = jnp.einsum('bij,bjo->bio', p, h)
        return jax.nn.elu(hp) if concat else hp

    hcat = jnp.concatenate(
        [layer(x, W, a, True) for (W, a) in params["heads"]], axis=-1)
    W_out, a_out = params["out"]
    return jax.nn.elu(layer(hcat, W_out, a_out, False)) + x


if __name__ == "__main__":
    key = jax.random.PRNGKey(0)
    B, N = 2, 16
    nfeat, nhid, nheads = 8, 16, 2
    nclass = nfeat          # residual `out + input` forces nclass == nfeat
    alpha = 0.2             # LeakyReLU negative slope

    kx, kadj, kp = jax.random.split(key, 3)
    x = jax.random.normal(kx, (B, N, nfeat), jnp.float32)
    adj = (jax.random.uniform(kadj, (B, N, N)) > 0.5).astype(jnp.float32)
    adj = jnp.maximum(adj, jnp.eye(N, dtype=jnp.float32)[None])  # self loops

    params = init_gat_params(kp, nfeat, nhid, nclass, nheads)

    fwd = jax.jit(functools.partial(gat_forward, alpha=alpha))
    out = fwd(x, adj, params)
    jax.block_until_ready(out)
    assert out.shape == (B, N, nclass) and out.dtype == jnp.float32
    assert bool(jnp.all(jnp.isfinite(out)))

    # Loose check vs. the f32 reference (kernel uses bf16 MXU operands and an
    # approximate EUP reciprocal, so exact equality is not expected).
    ref = _gat_reference(x, adj, params, alpha)
    err = float(jnp.max(jnp.abs(out - ref) / (1.0 + jnp.abs(ref))))
    assert err < 0.25, f"kernel vs f32 reference mismatch: {err}"
    print("KERNEL_OK")
</pallas_src>

<mosaic_0001>
module attributes {stable_mosaic.version = 11 : i64} {
  func.func @_gat_fused_kernel(%arg0: i32, %arg1: memref<1x16x8xf32, #tpu.memory_space<vmem>>, %arg2: memref<1x16x16xi8, #tpu.memory_space<vmem>>, %arg3: memref<8x32xf32, #tpu.memory_space<vmem>>, %arg4: memref<32x4xf32, #tpu.memory_space<vmem>>, %arg5: memref<32x8xf32, #tpu.memory_space<vmem>>, %arg6: memref<1x16xf32, #tpu.memory_space<vmem>>, %arg7: memref<1x16x8xf32, #tpu.memory_space<vmem>>) attributes {dimension_semantics = [#tpu.dimension_semantics<parallel>], iteration_bounds = array<i64: 2>, scalar_prefetch = 0 : i64, scratch_operands = 0 : i64, tpu.core_type = #tpu.core_type<tc>, window_params = [{transform_indices = @transform_0, window_bounds = array<i64: 1, 16, 8>}, {transform_indices = @transform_1, window_bounds = array<i64: 1, 16, 16>}, {pipeline_mode = #tpu.pipeline_mode<synchronous>, transform_indices = @transform_2, window_bounds = array<i64: 8, 32>}, {pipeline_mode = #tpu.pipeline_mode<synchronous>, transform_indices = @transform_3, window_bounds = array<i64: 32, 4>}, {pipeline_mode = #tpu.pipeline_mode<synchronous>, transform_indices = @transform_4, window_bounds = array<i64: 32, 8>}, {pipeline_mode = #tpu.pipeline_mode<synchronous>, transform_indices = @transform_5, window_bounds = array<i64: 1, 16>}, {transform_indices = @transform_6, window_bounds = array<i64: 1, 16, 8>}]} {
    %c0 = arith.constant 0 : index
    %c0_0 = arith.constant 0 : index
    %c0_1 = arith.constant 0 : index
    %0 = vector.load %arg2[%c0, %c0_0, %c0_1] : memref<1x16x16xi8, #tpu.memory_space<vmem>>, vector<1x16x16xi8>
    %1 = arith.sitofp %0 : vector<1x16x16xi8> to vector<1x16x16xf32>
    %cst = arith.constant 0.000000e+00 : f32
    %2 = vector.broadcast %cst : f32 to vector<1x16x16xf32>
    %3 = arith.cmpf ogt, %1, %2 : vector<1x16x16xf32>
    %cst_2 = arith.constant 0.000000e+00 : f32
    %cst_3 = arith.constant -9.000000e+15 : f32
    %4 = vector.broadcast %cst_2 : f32 to vector<1x16x16xf32>
    %5 = vector.broadcast %cst_3 : f32 to vector<1x16x16xf32>
    %6 = arith.select %3, %4, %5 : vector<1x16x16xi1>, vector<1x16x16xf32>
    %c0_4 = arith.constant 0 : index
    %c0_5 = arith.constant 0 : index
    %c0_6 = arith.constant 0 : index
    %7 = vector.load %arg1[%c0_4, %c0_5, %c0_6] : memref<1x16x8xf32, #tpu.memory_space<vmem>>, vector<1x16x8xf32>
    %8 = vector.shape_cast %7 : vector<1x16x8xf32> to vector<16x8xf32>
    %9 = arith.truncf %8 : vector<16x8xf32> to vector<16x8xbf16>
    %c0_7 = arith.constant 0 : index
    %c0_8 = arith.constant 0 : index
    %10 = vector.load %arg3[%c0_7, %c0_8] : memref<8x32xf32, #tpu.memory_space<vmem>>, vector<8x32xf32>
    %11 = arith.truncf %10 : vector<8x32xf32> to vector<8x32xbf16>
    %cst_9 = arith.constant dense<0.000000e+00> : vector<16x32xf32>
    %12 = tpu.matmul %9, %11, %cst_9 {dimension_numbers = #tpu.dot_dimension_numbers<[1], [0], [0], [1], [0, 0, 1, 1], [], []>} : vector<16x8xbf16>, vector<8x32xbf16>, vector<16x32xf32> -> vector<16x32xf32>
    %13 = arith.truncf %12 : vector<16x32xf32> to vector<16x32xbf16>
    %c0_10 = arith.constant 0 : index
    %c0_11 = arith.constant 0 : index
    %14 = vector.load %arg4[%c0_10, %c0_11] : memref<32x4xf32, #tpu.memory_space<vmem>>, vector<32x4xf32>
    %15 = arith.truncf %14 : vector<32x4xf32> to vector<32x4xbf16>
    %cst_12 = arith.constant dense<0.000000e+00> : vector<16x4xf32>
    %16 = tpu.matmul %13, %15, %cst_12 {dimension_numbers = #tpu.dot_dimension_numbers<[1], [0], [0], [1], [0, 0, 1, 1], [], []>} : vector<16x32xbf16>, vector<32x4xbf16>, vector<16x4xf32> -> vector<16x4xf32>
    %17 = vector.shape_cast %16 : vector<16x4xf32> to vector<1x16x4xf32>
    %18 = vector.shape_cast %13 : vector<16x32xbf16> to vector<1x16x32xbf16>
    %c0_13 = arith.constant 0 : index
    %c0_14 = arith.constant 0 : index
    %19 = vector.load %arg5[%c0_13, %c0_14] : memref<32x8xf32, #tpu.memory_space<vmem>>, vector<32x8xf32>
    %20 = arith.truncf %19 : vector<32x8xf32> to vector<32x8xbf16>
    %21 = vector.extract_strided_slice %18 {offsets = [0, 0, 0], sizes = [1, 16, 16], strides = [1, 1, 1]} : vector<1x16x32xbf16> to vector<1x16x16xbf16>
    %22 = vector.extract_strided_slice %17 {offsets = [0, 0, 0], sizes = [1, 16, 1], strides = [1, 1, 1]} : vector<1x16x4xf32> to vector<1x16x1xf32>
    %23 = vector.extract_strided_slice %17 {offsets = [0, 0, 2], sizes = [1, 16, 1], strides = [1, 1, 1]} : vector<1x16x4xf32> to vector<1x16x1xf32>
    %24 = vector.shape_cast %23 : vector<1x16x1xf32> to vector<1x16xf32>
    %25 = vector.shape_cast %24 : vector<1x16xf32> to vector<1x1x16xf32>
    %26 = vector.broadcast %22 : vector<1x16x1xf32> to vector<1x16x16xf32>
    %27 = vector.broadcast %25 : vector<1x1x16xf32> to vector<1x16x16xf32>
    %28 = arith.addf %26, %27 : vector<1x16x16xf32>
    %cst_15 = arith.constant 0.000000e+00 : f32
    %29 = vector.broadcast %cst_15 : f32 to vector<1x16x16xf32>
    %30 = arith.cmpf ogt, %28, %29 : vector<1x16x16xf32>
    %cst_16 = arith.constant 2.000000e-01 : f32
    %31 = vector.broadcast %cst_16 : f32 to vector<1x16x16xf32>
    %32 = arith.mulf %31, %28 : vector<1x16x16xf32>
    %33 = arith.select %30, %28, %32 : vector<1x16x16xi1>, vector<1x16x16xf32>
    %34 = arith.addf %33, %6 : vector<1x16x16xf32>
    %cst_17 = arith.constant dense<0xFF800000> : vector<1x16xf32>
    %35 = vector.multi_reduction <maximumf>, %34, %cst_17 [2] : vector<1x16x16xf32> to vector<1x16xf32>
    %36 = vector.shape_cast %35 : vector<1x16xf32> to vector<1x16x1xf32>
    %37 = vector.broadcast %36 : vector<1x16x1xf32> to vector<1x16x16xf32>
    %38 = arith.subf %34, %37 : vector<1x16x16xf32>
    %39 = math.exp %38 : vector<1x16x16xf32>
    %cst_18 = arith.constant dense<0.000000e+00> : vector<1x16xf32>
    %40 = vector.multi_reduction <add>, %39, %cst_18 [2] : vector<1x16x16xf32> to vector<1x16xf32>
    %41 = vector.shape_cast %40 : vector<1x16xf32> to vector<1x16x1xf32>
    %42 = tpu.reciprocal %41 {approx = true} : vector<1x16x1xf32> -> vector<1x16x1xf32>
    %43 = vector.broadcast %42 : vector<1x16x1xf32> to vector<1x16x16xf32>
    %44 = arith.mulf %39, %43 : vector<1x16x16xf32>
    %45 = arith.truncf %44 : vector<1x16x16xf32> to vector<1x16x16xbf16>
    "tpu.trace_start"() <{level = 10 : i32, message = "bij,bjk->bik"}> : () -> ()
    %cst_19 = arith.constant dense<0.000000e+00> : vector<1x16x16xf32>
    %46 = tpu.matmul %45, %21, %cst_19 {dimension_numbers = #tpu.dot_dimension_numbers<[2], [1], [1], [2], [0, 0, 0, 1, 1, 2], [0], [0]>} : vector<1x16x16xbf16>, vector<1x16x16xbf16>, vector<1x16x16xf32> -> vector<1x16x16xf32>
    %cst_20 = arith.constant 0.000000e+00 : f32
    "tpu.trace_stop"() : () -> ()
    %47 = vector.broadcast %cst_20 : f32 to vector<1x16x16xf32>
    %48 = arith.cmpf ogt, %46, %47 : vector<1x16x16xf32>
    %49 = math.exp %46 : vector<1x16x16xf32>
    %cst_21 = arith.constant 1.000000e+00 : f32
    %50 = vector.broadcast %cst_21 : f32 to vector<1x16x16xf32>
    %51 = arith.subf %49, %50 : vector<1x16x16xf32>
    %52 = arith.select %48, %46, %51 : vector<1x16x16xi1>, vector<1x16x16xf32>
    %53 = arith.truncf %52 : vector<1x16x16xf32> to vector<1x16x16xbf16>
    %54 = vector.shape_cast %53 : vector<1x16x16xbf16> to vector<16x16xbf16>
    %55 = vector.extract_strided_slice %20 {offsets = [0, 0], sizes = [16, 8], strides = [1, 1]} : vector<32x8xbf16> to vector<16x8xbf16>
    %cst_22 = arith.constant dense<0.000000e+00> : vector<16x8xf32>
    %56 = tpu.matmul %54, %55, %cst_22 {dimension_numbers = #tpu.dot_dimension_numbers<[1], [0], [0], [1], [0, 0, 1, 1], [], []>} : vector<16x16xbf16>, vector<16x8xbf16>, vector<16x8xf32> -> vector<16x8xf32>
    %57 = vector.shape_cast %56 : vector<16x8xf32> to vector<1x16x8xf32>
    %58 = vector.extract_strided_slice %18 {offsets = [0, 0, 16], sizes = [1, 16, 16], strides = [1, 1, 1]} : vector<1x16x32xbf16> to vector<1x16x16xbf16>
    %59 = vector.extract_strided_slice %17 {offsets = [0, 0, 1], sizes = [1, 16, 1], strides = [1, 1, 1]} : vector<1x16x4xf32> to vector<1x16x1xf32>
    %60 = vector.extract_strided_slice %17 {offsets = [0, 0, 3], sizes = [1, 16, 1], strides = [1, 1, 1]} : vector<1x16x4xf32> to vector<1x16x1xf32>
    %61 = vector.shape_cast %60 : vector<1x16x1xf32> to vector<1x16xf32>
    %62 = vector.shape_cast %61 : vector<1x16xf32> to vector<1x1x16xf32>
    %63 = vector.broadcast %59 : vector<1x16x1xf32> to vector<1x16x16xf32>
    %64 = vector.broadcast %62 : vector<1x1x16xf32> to vector<1x16x16xf32>
    %65 = arith.addf %63, %64 : vector<1x16x16xf32>
    %cst_23 = arith.constant 0.000000e+00 : f32
    %66 = vector.broadcast %cst_23 : f32 to vector<1x16x16xf32>
    %67 = arith.cmpf ogt, %65, %66 : vector<1x16x16xf32>
    %cst_24 = arith.constant 2.000000e-01 : f32
    %68 = vector.broadcast %cst_24 : f32 to vector<1x16x16xf32>
    %69 = arith.mulf %68, %65 : vector<1x16x16xf32>
    %70 = arith.select %67, %65, %69 : vector<1x16x16xi1>, vector<1x16x16xf32>
    %71 = arith.addf %70, %6 : vector<1x16x16xf32>
    %cst_25 = arith.constant dense<0xFF800000> : vector<1x16xf32>
    %72 = vector.multi_reduction <maximumf>, %71, %cst_25 [2] : vector<1x16x16xf32> to vector<1x16xf32>
    %73 = vector.shape_cast %72 : vector<1x16xf32> to vector<1x16x1xf32>
    %74 = vector.broadcast %73 : vector<1x16x1xf32> to vector<1x16x16xf32>
    %75 = arith.subf %71, %74 : vector<1x16x16xf32>
    %76 = math.exp %75 : vector<1x16x16xf32>
    %cst_26 = arith.constant dense<0.000000e+00> : vector<1x16xf32>
    %77 = vector.multi_reduction <add>, %76, %cst_26 [2] : vector<1x16x16xf32> to vector<1x16xf32>
    %78 = vector.shape_cast %77 : vector<1x16xf32> to vector<1x16x1xf32>
    %79 = tpu.reciprocal %78 {approx = true} : vector<1x16x1xf32> -> vector<1x16x1xf32>
    %80 = vector.broadcast %79 : vector<1x16x1xf32> to vector<1x16x16xf32>
    %81 = arith.mulf %76, %80 : vector<1x16x16xf32>
    %82 = arith.truncf %81 : vector<1x16x16xf32> to vector<1x16x16xbf16>
    "tpu.trace_start"() <{level = 10 : i32, message = "bij,bjk->bik"}> : () -> ()
    %cst_27 = arith.constant dense<0.000000e+00> : vector<1x16x16xf32>
    %83 = tpu.matmul %82, %58, %cst_27 {dimension_numbers = #tpu.dot_dimension_numbers<[2], [1], [1], [2], [0, 0, 0, 1, 1, 2], [0], [0]>} : vector<1x16x16xbf16>, vector<1x16x16xbf16>, vector<1x16x16xf32> -> vector<1x16x16xf32>
    %cst_28 = arith.constant 0.000000e+00 : f32
    "tpu.trace_stop"() : () -> ()
    %84 = vector.broadcast %cst_28 : f32 to vector<1x16x16xf32>
    %85 = arith.cmpf ogt, %83, %84 : vector<1x16x16xf32>
    %86 = math.exp %83 : vector<1x16x16xf32>
    %cst_29 = arith.constant 1.000000e+00 : f32
    %87 = vector.broadcast %cst_29 : f32 to vector<1x16x16xf32>
    %88 = arith.subf %86, %87 : vector<1x16x16xf32>
    %89 = arith.select %85, %83, %88 : vector<1x16x16xi1>, vector<1x16x16xf32>
    %90 = arith.truncf %89 : vector<1x16x16xf32> to vector<1x16x16xbf16>
    %91 = vector.shape_cast %90 : vector<1x16x16xbf16> to vector<16x16xbf16>
    %92 = vector.extract_strided_slice %20 {offsets = [16, 0], sizes = [16, 8], strides = [1, 1]} : vector<32x8xbf16> to vector<16x8xbf16>
    %cst_30 = arith.constant dense<0.000000e+00> : vector<16x8xf32>
    %93 = tpu.matmul %91, %92, %cst_30 {dimension_numbers = #tpu.dot_dimension_numbers<[1], [0], [0], [1], [0, 0, 1, 1], [], []>} : vector<16x16xbf16>, vector<16x8xbf16>, vector<16x8xf32> -> vector<16x8xf32>
    %94 = vector.shape_cast %93 : vector<16x8xf32> to vector<1x16x8xf32>
    %95 = arith.addf %57, %94 : vector<1x16x8xf32>
    %c0_31 = arith.constant 0 : index
    %c0_32 = arith.constant 0 : index
    %96 = vector.load %arg6[%c0_31, %c0_32] : memref<1x16xf32, #tpu.memory_space<vmem>>, vector<1x16xf32>
    %97 = vector.extract_strided_slice %96 {offsets = [0, 0], sizes = [1, 8], strides = [1, 1]} : vector<1x16xf32> to vector<1x8xf32>
    %98 = vector.shape_cast %97 : vector<1x8xf32> to vector<1x1x8xf32>
    %99 = vector.broadcast %98 : vector<1x1x8xf32> to vector<1x16x8xf32>
    %100 = arith.mulf %95, %99 : vector<1x16x8xf32>
    %cst_33 = arith.constant dense<0.000000e+00> : vector<1x16xf32>
    %101 = vector.multi_reduction <add>, %100, %cst_33 [2] : vector<1x16x8xf32> to vector<1x16xf32>
    %102 = vector.shape_cast %101 : vector<1x16xf32> to vector<1x16x1xf32>
    %103 = vector.extract_strided_slice %96 {offsets = [0, 8], sizes = [1, 8], strides = [1, 1]} : vector<1x16xf32> to vector<1x8xf32>
    %104 = vector.shape_cast %103 : vector<1x8xf32> to vector<1x1x8xf32>
    %105 = vector.broadcast %104 : vector<1x1x8xf32> to vector<1x16x8xf32>
    %106 = arith.mulf %95, %105 : vector<1x16x8xf32>
    %cst_34 = arith.constant dense<0.000000e+00> : vector<1x16xf32>
    %107 = vector.multi_reduction <add>, %106, %cst_34 [2] : vector<1x16x8xf32> to vector<1x16xf32>
    %108 = vector.shape_cast %107 : vector<1x16xf32> to vector<1x1x16xf32>
    %109 = arith.truncf %95 : vector<1x16x8xf32> to vector<1x16x8xbf16>
    %110 = vector.broadcast %102 : vector<1x16x1xf32> to vector<1x16x16xf32>
    %111 = vector.broadcast %108 : vector<1x1x16xf32> to vector<1x16x16xf32>
    %112 = arith.addf %110, %111 : vector<1x16x16xf32>
    %cst_35 = arith.constant 0.000000e+00 : f32
    %113 = vector.broadcast %cst_35 : f32 to vector<1x16x16xf32>
    %114 = arith.cmpf ogt, %112, %113 : vector<1x16x16xf32>
    %cst_36 = arith.constant 2.000000e-01 : f32
    %115 = vector.broadcast %cst_36 : f32 to vector<1x16x16xf32>
    %116 = arith.mulf %115, %112 : vector<1x16x16xf32>
    %117 = arith.select %114, %112, %116 : vector<1x16x16xi1>, vector<1x16x16xf32>
    %118 = arith.addf %117, %6 : vector<1x16x16xf32>
    %cst_37 = arith.constant dense<0xFF800000> : vector<1x16xf32>
    %119 = vector.multi_reduction <maximumf>, %118, %cst_37 [2] : vector<1x16x16xf32> to vector<1x16xf32>
    %120 = vector.shape_cast %119 : vector<1x16xf32> to vector<1x16x1xf32>
    %121 = vector.broadcast %120 : vector<1x16x1xf32> to vector<1x16x16xf32>
    %122 = arith.subf %118, %121 : vector<1x16x16xf32>
    %123 = math.exp %122 : vector<1x16x16xf32>
    %cst_38 = arith.constant dense<0.000000e+00> : vector<1x16xf32>
    %124 = vector.multi_reduction <add>, %123, %cst_38 [2] : vector<1x16x16xf32> to vector<1x16xf32>
    %125 = vector.shape_cast %124 : vector<1x16xf32> to vector<1x16x1xf32>
    %126 = tpu.reciprocal %125 {approx = true} : vector<1x16x1xf32> -> vector<1x16x1xf32>
    %127 = vector.broadcast %126 : vector<1x16x1xf32> to vector<1x16x16xf32>
    %128 = arith.mulf %123, %127 : vector<1x16x16xf32>
    %129 = arith.truncf %128 : vector<1x16x16xf32> to vector<1x16x16xbf16>
    "tpu.trace_start"() <{level = 10 : i32, message = "bij,bjk->bik"}> : () -> ()
    %cst_39 = arith.constant dense<0.000000e+00> : vector<1x16x8xf32>
    %130 = tpu.matmul %129, %109, %cst_39 {dimension_numbers = #tpu.dot_dimension_numbers<[2], [1], [1], [2], [0, 0, 0, 1, 1, 2], [0], [0]>} : vector<1x16x16xbf16>, vector<1x16x8xbf16>, vector<1x16x8xf32> -> vector<1x16x8xf32>
    %cst_40 = arith.constant 0.000000e+00 : f32
    "tpu.trace_stop"() : () -> ()
    %131 = vector.broadcast %cst_40 : f32 to vector<1x16x8xf32>
    %132 = arith.cmpf ogt, %130, %131 : vector<1x16x8xf32>
    %133 = math.exp %130 : vector<1x16x8xf32>
    %cst_41 = arith.constant 1.000000e+00 : f32
    %134 = vector.broadcast %cst_41 : f32 to vector<1x16x8xf32>
    %135 = arith.subf %133, %134 : vector<1x16x8xf32>
    %136 = arith.select %132, %130, %135 : vector<1x16x8xi1>, vector<1x16x8xf32>
    %c0_42 = arith.constant 0 : index
    %c0_43 = arith.constant 0 : index
    %c0_44 = arith.constant 0 : index
    %137 = vector.load %arg1[%c0_42, %c0_43, %c0_44] : memref<1x16x8xf32, #tpu.memory_space<vmem>>, vector<1x16x8xf32>
    %138 = arith.addf %136, %137 : vector<1x16x8xf32>
    %c0_45 = arith.constant 0 : index
    %c0_46 = arith.constant 0 : index
    %c0_47 = arith.constant 0 : index
    %139 = vector.load %arg7[%c0_45, %c0_46, %c0_47] : memref<1x16x8xf32, #tpu.memory_space<vmem>>, vector<1x16x8xf32>
    tpu.vector_store %arg7[%c0_45, %c0_46, %c0_47], %138 {strides = array<i32>} : memref<1x16x8xf32, #tpu.memory_space<vmem>>, vector<1x16x8xf32>,
    return
  }
  func.func @transform_0(%arg0: i32) -> (i32, i32, i32) {
    %c0_i32 = arith.constant 0 : i32
    %c0_i32_0 = arith.constant 0 : i32
    %c0_i32_1 = arith.constant 0 : i32
    return %arg0, %c0_i32, %c0_i32_0 : i32, i32, i32
  }
  func.func @transform_1(%arg0: i32) -> (i32, i32, i32) {
    %c0_i32 = arith.constant 0 : i32
    %c0_i32_0 = arith.constant 0 : i32
    %c0_i32_1 = arith.constant 0 : i32
    return %arg0, %c0_i32, %c0_i32_0 : i32, i32, i32
  }
  func.func @transform_2(%arg0: i32) -> (i32, i32) {
    %c0_i32 = arith.constant 0 : i32
    %c0_i32_0 = arith.constant 0 : i32
    %c0_i32_1 = arith.constant 0 : i32
    return %c0_i32, %c0_i32_0 : i32, i32
  }
  func.func @transform_3(%arg0: i32) -> (i32, i32) {
    %c0_i32 = arith.constant 0 : i32
    %c0_i32_0 = arith.constant 0 : i32
    %c0_i32_1 = arith.constant 0 : i32
    return %c0_i32, %c0_i32_0 : i32, i32
  }
  func.func @transform_4(%arg0: i32) -> (i32, i32) {
    %c0_i32 = arith.constant 0 : i32
    %c0_i32_0 = arith.constant 0 : i32
    %c0_i32_1 = arith.constant 0 : i32
    return %c0_i32, %c0_i32_0 : i32, i32
  }
  func.func @transform_5(%arg0: i32) -> (i32, i32) {
    %c0_i32 = arith.constant 0 : i32
    %c0_i32_0 = arith.constant 0 : i32
    %c0_i32_1 = arith.constant 0 : i32
    return %c0_i32, %c0_i32_0 : i32, i32
  }
  func.func @transform_6(%arg0: i32) -> (i32, i32, i32) {
    %c0_i32 = arith.constant 0 : i32
    %c0_i32_0 = arith.constant 0 : i32
    %c0_i32_1 = arith.constant 0 : i32
    return %arg0, %c0_i32, %c0_i32_0 : i32, i32, i32
  }
}

</mosaic_0001>

<bundles_post_ra>
// kernel: gat_forward.1
= control target key start
LH: loop header
LB: loop body
LE: loop exit
PB: predicated region body
PF: predicated region fallthrough
CT: control target
= control target key end

     0   :  { %s1152_s21 = smov 0   ;;  %s1292_s0 = inlined_call_operand.vmem [shape: f32[2,16,8], index: 0, kind: input, shape index: {}]   ;;  %s1293_s1 = inlined_call_operand.vmem [shape: s8[2,16,16], index: 1, kind: input, shape index: {}]   ;;  %s1294_s2 = inlined_call_operand.vmem [shape: f32[8,32], index: 2, kind: input, shape index: {}]   ;;  %s1295_s3 = inlined_call_operand.vmem [shape: f32[32,4], index: 3, kind: input, shape index: {}]   ;;  %s1296_s4 = inlined_call_operand.vmem [shape: f32[32,8], index: 4, kind: input, shape index: {}]   ;;  %s1297_s5 = inlined_call_operand.vmem [shape: f32[1,16], index: 5, kind: input, shape index: {}]   ;;  %s1298_s6 = inlined_call_operand.vmem [shape: f32[2,16,8], index: 6, kind: output, shape index: {}]  }
   0x1 LB: > { %s943_s22 = sadd.s32 4294967295, %s1106_s21   ;;  %p947_p0 = scmp.ge.s32.totalorder %s1106_s21, 1  ;;  %s1106_s21 = sphi %s1152_s21, %s16_s21  }
   0x2   : > { %p222_p1 = scmp.lt.s32.totalorder %s1106_s21, 3 }
   0x4   : > { %p223_p2 = pnand %p947_p0, %p222_p1 }
   0x5   : > { %v286_v0 = vld [vmem:[%s1294_s2] sm:$0xff] (!%p223_p2)  ;;  %vm292_vm0 = vcmask (!%p223_p2), 1043456   ;;  %p257_p3 = scmp.lt.s32.totalorder (!%p223_p2), %s943_s22, 1  ;;  %v1108_v1 = vmov (!%p223_p2), 0.0   ;;  %vm1109_vm1 = vmmov (!%p223_p2), 0   ;;  %v339_v4 = vld [vmem:[%s1295_s3 + $0x8] sm:$0xff] (!%p223_p2)  ;;  %v411_v26 = vlaneseq (!%p223_p2) }
   0x6   : > { %226 = sbr.rel (%p223_p2) target bundleno = 2069 (0x815), region = 44  ;;  %992 = vmatprep.subr.bf16.mxu0 (!%p223_p2), %v1108_v1  ;;  %v287_v2 = vpack.c.bf16 (!%p223_p2), %v286_v0, %v286_v0  ;;  %994 = vmatprep.mubr.msk.bf16.mxu0 (!%p223_p2), %vm1109_vm1, %v1108_v1  ;;  %v338_v3 = vld [vmem:[%s1295_s3] sm:$0xff] (!%p223_p2)  ;;  %vm288_vm2 = vcmask (!%p223_p2), 64512   ;;  %v340_v10 = vld [vmem:[%s1295_s3 + $0x10] sm:$0xff] (!%p223_p2)  ;;  %v341_v11 = vld [vmem:[%s1295_s3 + $0x18] sm:$0xff] (!%p223_p2)  ;;  %v1110_v13 = vmov (!%p223_p2), 2  }
   0x7   : > { %998 = vmatprep.subr.bf16.mxu1 (!%p223_p2), %v1108_v1  ;;  %v342_v5 = vpack.c.bf16 (!%p223_p2), %v339_v4, %v338_v3  ;;  %1002 = vmatprep.mubr.msk.bf16.mxu1 (!%p223_p2), %vm1109_vm1, %v1108_v1  ;;  %v343_v12 = vpack.c.bf16 (!%p223_p2), %v341_v11, %v340_v10  ;;  %v1111_v14 = vmov (!%p223_p2), 0   ;;  %vm344_vm3 = vcmask (!%p223_p2), 261120   ;;  %s1115_s17 = smov (!%p223_p2), 112   ;;  %s1116_s26 = smov (!%p223_p2), 120  }
   0x8   : > { %v294_v6 = vsel (!%p223_p2), %vm292_vm0, %v287_v2, 0  ;;  %1057 = vset.pattern.permute.xlu0 (!%p223_p2), %v1110_v13  ;;  %1058 = vset.pattern.permute.xlu1 (!%p223_p2), %v1111_v14  ;;  %v1112_v24 = vmov (!%p223_p2), 3   ;;  %v1113_v25 = vmov (!%p223_p2), 1   ;;  %v412_v27 = vand.u32 (!%p223_p2), 127, %v411_v26 }
   0x9   : > { %993 = vmatpush3.bf16.msra.mxu0 (!%p223_p2), %v294_v6  ;;  %999 = vmatpush3.bf16.msra.mxu1 (!%p223_p2), %v342_v5  ;;  %v414_v29 = vshrl.u32 (!%p223_p2), %v411_v26, 7  ;;  %vm422_vm4 = vcmask (!%p223_p2), 130112   ;;  %v1114_v48 = vmov (!%p223_p2), -9e+15   ;;  %vm447_vm9 = vcmask (!%p223_p2), 130048  }
   0xa   : > { %1000 = vmatprep.subr.bf16.mxu1 (!%p223_p2), %v1108_v1  ;;  %1006 = vmatprep.subr.bf16.mxu0 (!%p223_p2), %v1108_v1  ;;  %v417_v30 = vadd.s32 (!%p223_p2), 4294967288, %v412_v27 }
   0xb   : > { %v1212_v35 = vsub.s32 (!%p223_p2), %v412_v27, %v414_v29 }
   0xc   : > { %v1214_v36 = vsub.s32 (!%p223_p2), %v417_v30, %v414_v29 }
   0xd   : > { %s1300_s22 = smov (!%p257_p3, %s943_s22), 1  ;;  %1001 = vmatpush3.bf16.msra.mxu1 %v343_v12 }
   0xe   : > { %s970_s29 = sshll.u32 %s1300_s22, 4  ;;  %1012 = vmatprep.subr.bf16.mxu1 %v1108_v1  ;;  %s971_s13 = sshll.u32 %s1300_s22, 2 }
   0xf   : > { %s261_s8 = scalar_lea.vmem %s1292_s0, %s970_s29  ;;  %s266_s16 = scalar_lea.vmem %s1293_s1, %s971_s13 }
  0x10   : > { %v1185_v7 = vld [vmem:[%s261_s8] sm:$0xff]  ;;  %v1187_v8 = vld [vmem:[%s261_s8 + $0x8] sm:$0xff]  ;;  %s271_s10 = scalar_lea.vmem %s1298_s6, %s970_s29 }
  0x11   : > { %v285_v9 = vpack.c.bf16 %v1187_v8, %v1185_v7  ;;  %v974_v28 = vld [vmem:[%s266_s16] sm:$0xf]  }
  0x12   : > { %v976_v31 = vunpack.c.1.s8 %v974_v28  ;;  %v975_v34 = vunpack.c.0.s8 %v974_v28 }
  0x13   : > { %995 = vmatmul.mubr.msk.bf16.vlgmr.msra.gmra.mrb[0].mxu0 %vm288_vm2, %v285_v9 }
  0x14   : > { %1008 = vmatprep.mubr.msk.bf16.mxu0 %vm1109_vm1, %v1108_v1  ;;  %v278_v37 = vcvt.s32.f32 %v976_v31  ;;  %v277_v40 = vcvt.s32.f32 %v975_v34 }
  0x16   : > { %vm280_vm5 = vcmp.gt.f32.partialorder %v278_v37, 0.0  ;;  %vm279_vm6 = vcmp.gt.f32.partialorder %v277_v40, 0.0 }
  0x17   : > { %v1219_v49 = vsel %vm280_vm5, 0.0, %v1114_v48  ;;  %v1223_v53 = vsel %vm279_vm6, 0.0, %v1114_v48 }
  0xe6   : > { %v330_v15 = vpop.f32.mrb[0].mxu0 }
  0xe7   : > { %v996_v16 = vpop.f32.mrb[1].mxu0 }
  0xe8   : > { %v333_v17 = vpop.f32.mrb[2].mxu0 }
  0xe9   : > { %v1201_v18 = vpack.c.bf16 %v333_v17, %v330_v15  ;;  %v997_v19 = vpop.f32.mrb[3].mxu0 }
  0xeb   : > { %1003 = vmatmul.mubr.msk.bf16.vlgmr.msra.gmra.mrb[0].mxu1 %vm344_vm3, %v1201_v18  ;;  %1007 = vmatpush3.bf16.msra.mxu0 %v1201_v18 }
  0xec   : > { %1018 = vmatprep.subr.bf16.mxu0 %v1108_v1  ;;  %1014 = vmatprep.mubr.msk.bf16.mxu1 %vm1109_vm1, %v1108_v1 }
 0x1be   : > { %v382_v20 = vpop.f32.mrb[0].mxu1 }
 0x1bf   : > { %397 = vperm.xlu1 %1058, %v382_v20   ;;  %406 = vperm.xlu0 %1057, %v382_v20   ;;  %v1004_v21 = vpop.f32.mrb[1].mxu1 }
 0x1c0   : > { %v385_v22 = vpop.f32.mrb[2].mxu1 }
 0x1c1   : > { %v1005_v23 = vpop.f32.mrb[3].mxu1 }
 0x1c3   : > { %402 = vperm.xlu1 %1058, %v385_v22   ;;  %409 = vperm.xlu0 %1057, %v385_v22  }
 0x1c7   : > { %1060 = vset.pattern.permute.xlu1 %v1112_v24  ;;  %1059 = vset.pattern.permute.xlu0 %v1112_v24 }
 0x1c8   : > { %582 = vperm.xlu1 %1060, %v385_v22   ;;  %579 = vperm.xlu0 %1059, %v382_v20  }
 0x1cc   : > { %1061 = vset.pattern.permute.xlu1 %v1113_v25  ;;  %1062 = vset.pattern.permute.xlu0 %v1113_v25 }
 0x1cd   : > { %571 = vperm.xlu1 %1061, %v382_v20   ;;  %575 = vperm.xlu0 %1062, %v385_v22  }
 0x1d1   : > { %1063 = vset.pattern.permute.xlu0 %v1112_v24 }
 0x23e   : > { %v398_v32 = vpop.permute.xlu1 %397  ;;  %v407_v33 = vpop.permute.xlu0 %406 }
 0x23f   : > { %v416_v41 = vrot.slane %v407_v33, %v1212_v35 }
 0x242   : > { %v403_v38 = vpop.permute.xlu1 %402  ;;  %v410_v39 = vpop.permute.xlu0 %409 }
 0x243   : > { %v421_v42 = vrot.slane %v410_v39, %v1214_v36 }
 0x245   : > { %v423_v43 = vsel %vm422_vm4, %v421_v42, %v416_v41 }
 0x246   : > { %v437_v44 = vadd.f32 %v423_v43, %v398_v32  ;;  %v438_v45 = vadd.f32 %v423_v43, %v403_v38 }
 0x247   : > { %v583_v46 = vpop.permute.xlu1 %582  ;;  %v580_v47 = vpop.permute.xlu0 %579 }
 0x248   : > { %v591_v50 = vrot.slane %v583_v46, %v1214_v36  ;;  %v587_v51 = vrot.slane %v580_v47, %v1212_v35  ;;  %vm440_vm7 = vcmp.gt.f32.partialorder %v438_v45, 0.0  ;;  %v442_v52 = vmul.f32 0.2, %v438_v45 }
 0x249   : > { %vm439_vm8 = vcmp.gt.f32.partialorder %v437_v44, 0.0  ;;  %v441_v54 = vmul.f32 0.2, %v437_v44 }
 0x24a   : > { %v444_v55 = vsel %vm440_vm7, %v438_v45, %v442_v52  ;;  %v592_v59 = vsel %vm422_vm4, %v591_v50, %v587_v51  ;;  %v389_v51 = vld [vmem:[%s1296_s4] sm:$0xff]  ;;  %v390_v52 = vld [vmem:[%s1296_s4 + $0x8] sm:$0xff] }
 0x24b   : > { %v446_v56 = vadd.f32 %v444_v55, %v1219_v49  ;;  %v443_v57 = vsel %vm439_vm8, %v437_v44, %v441_v54  ;;  %v393_v54 = vpack.c.bf16 %v390_v52, %v389_v51  ;;  %v964_v55 = vld [vmem:[%s1297_s5] ss:$0 sm:$0xff] }
 0x24c   : > { %v572_v58 = vpop.permute.xlu1 %571  ;;  %v576_v60 = vpop.permute.xlu0 %575  ;;  %v445_v61 = vadd.f32 %v443_v57, %v1223_v53 }
 0x24d   : > { %v600_v62 = vadd.f32 %v592_v59, %v572_v58  ;;  %v601_v63 = vadd.f32 %v592_v59, %v576_v60  ;;  %v451_v0 = vsel %vm447_vm9, %v446_v56, -inf  ;;  %1013 = vmatpush3.bf16.msra.mxu1 %v393_v54 }
 0x24e   : > { %452 = vmax.xlane.f32.xlu0 %v451_v0  ;;  %v448_v2 = vsel %vm447_vm9, %v445_v61, -inf  ;;  %1024 = vmatprep.subr.bf16.mxu1 %v1108_v1 }
 0x24f   : > { %vm602_vm10 = vcmp.gt.f32.partialorder %v600_v62, 0.0  ;;  %v604_v3 = vmul.f32 0.2, %v600_v62  ;;  %vm603_vm11 = vcmp.gt.f32.partialorder %v601_v63, 0.0  ;;  %v605_v4 = vmul.f32 0.2, %v601_v63  ;;  %449 = vmax.xlane.f32.xlu1 %v448_v2 }
 0x251   : > { %v606_v5 = vsel %vm602_vm10, %v600_v62, %v604_v3  ;;  %v607_v6 = vsel %vm603_vm11, %v601_v63, %v605_v4 }
 0x252   : > { %v608_v9 = vadd.f32 %v606_v5, %v1223_v53  ;;  %v609_v10 = vadd.f32 %v607_v6, %v1219_v49 }
 0x254   : > { %v610_v11 = vsel %vm447_vm9, %v608_v9, -inf  ;;  %v613_v12 = vsel %vm447_vm9, %v609_v10, -inf }
 0x255   : > { %611 = vmax.xlane.f32.xlu1 %v610_v11  ;;  %614 = vmax.xlane.f32.xlu0 %v613_v12  ;;  %v392_v11 = vld [vmem:[%s1296_s4 + $0x18] sm:$0xff] }
 0x2db   : > { %v453_v13 = vpop.xlane.xlu0 %452 }
 0x2dc   : > { %v450_v14 = vpop.xlane.xlu1 %449  ;;  %v455_v15 = vsub.f32 %v446_v56, %v453_v13 }
 0x2dd   : > { %v454_v16 = vsub.f32 %v445_v61, %v450_v14 }
 0x2de   : > { %v458_v17 = vmul.f32 1.442695, %v455_v15 }
 0x2df   : > { %v456_v19 = vmul.f32 1.442695, %v454_v16 }
 0x2e0   : > { %1064 = vpow2.f32 %v458_v17 }
 0x2e1   : > { %1066 = vpow2.f32 %v456_v19 }
 0x2e2   : > { %v612_v20 = vpop.xlane.xlu1 %611  ;;  %v615_v21 = vpop.xlane.xlu0 %614 }
 0x2e3   : > { %v616_v22 = vsub.f32 %v608_v9, %v612_v20  ;;  %v617_v23 = vsub.f32 %v609_v10, %v615_v21  ;;  %v391_v10 = vld [vmem:[%s1296_s4 + $0x10] sm:$0xff] }
 0x2e4   : > { %v394_v15 = vpack.c.bf16 %v392_v11, %v391_v10 }
 0x2e5   : > { %v618_v24 = vmul.f32 1.442695, %v616_v22  ;;  %v620_v25 = vmul.f32 1.442695, %v617_v23 }
 0x2e7   : > { %1068 = vpow2.f32 %v618_v24 }
 0x2e8   : > { %1070 = vpow2.f32 %v620_v25 }
 0x2ea   : > { %v1065_v26 = vpop.eup %1064 }
 0x2eb   : > { %v1067_v27 = vpop.eup %1066  ;;  %v463_v28 = vsel %vm447_vm9, %v1065_v26, 0.0 }
 0x2ec   : > { %v460_v29 = vsel %vm447_vm9, %v1067_v27, 0.0  ;;  %464 = vadd.xlane.f32.xlu0 %v463_v28 }
 0x2ed   : > { %461 = vadd.xlane.f32.xlu1 %v460_v29 }
 0x2f1   : > { %v1069_v30 = vpop.eup %1068 }
 0x2f2   : > { %v1071_v31 = vpop.eup %1070  ;;  %v622_v32 = vsel %vm447_vm9, %v1069_v30, 0.0 }
 0x2f3   : > { %623 = vadd.xlane.f32.xlu1 %v622_v32  ;;  %v625_v33 = vsel %vm447_vm9, %v1071_v31, 0.0 }
 0x2f4   : > { %626 = vadd.xlane.f32.xlu0 %v625_v33 }
 0x304   : > { %634 = vrot.lane.b32.xlu1 %v1201_v18, %s1115_s17 }
 0x30a   : > { %753 = vrot.lane.b32.xlu0 %v964_v55, %s1116_s26 }
 0x379   : > { %v465_v34 = vpop.xlane.xlu0 %464 }
 0x37a   : > { %v462_v37 = vpop.xlane.xlu1 %461  ;;  %1072 = vrcp.f32 %v465_v34 }
 0x37b   : > { %1074 = vrcp.f32 %v462_v37 }
 0x380   : > { %v624_v38 = vpop.xlane.xlu1 %623 }
 0x381   : > { %1076 = vrcp.f32 %v624_v38  ;;  %v627_v39 = vpop.xlane.xlu0 %626 }
 0x382   : > { %1078 = vrcp.f32 %v627_v39 }
 0x384   : > { %v1073_v40 = vpop.eup %1072  ;;  %v635_v45 = vpop.permute.xlu1 %634 }
 0x385   : > { %v1075_v41 = vpop.eup %1074  ;;  %v469_v42 = vmul.f32 %v1073_v40, %v1065_v26  ;;  %v754_v25 = vpop.permute.xlu0 %753 }
 0x386   : > { %v468_v43 = vmul.f32 %v1075_v41, %v1067_v27 }
 0x388   : > { %v470_v44 = vpack.c.bf16 %v469_v42, %v468_v43 }
 0x38a   : > { %1009 = vmatmul.mubr.msk.bf16.vlgmr.msra.gmra.mrb[4].mxu0 %vm447_vm9, %v470_v44 }
 0x38b   : > { %v1077_v46 = vpop.eup %1076  ;;  %1019 = vmatpush3.bf16.msra.mxu0 %v635_v45  ;;  %1020 = vmatprep.mubr.msk.bf16.mxu0 %vm1109_vm1, %v1108_v1 }
 0x38c   : > { %v1079_v18 = vpop.eup %1078  ;;  %v630_v47 = vmul.f32 %v1077_v46, %v1069_v30  ;;  %1030 = vmatprep.subr.bf16.mxu0 %v1108_v1 }
 0x38d   : > { %v631_v48 = vmul.f32 %v1079_v18, %v1071_v31 }
 0x38f   : > { %v632_v50 = vpack.c.bf16 %v631_v48, %v630_v47 }
 0x392   : > { %1021 = vmatmul.mubr.msk.bf16.vlgmr.msra.gmra.mrb[8].mxu0 %vm447_vm9, %v632_v50 }
 0x393   : > { %1032 = vmatprep.mubr.msk.bf16.mxu0 %vm1109_vm1, %v1108_v1 }
 0x45d   : > { %v508_v56 = vpop.f32.mrb[4].mxu0 }
 0x45e   : > { %v517_v57 = vmul.f32 1.442695, %v508_v56  ;;  %v1010_v58 = vpop.f32.mrb[5].mxu0  ;;  %vm515_vm12 = vcmp.gt.f32.partialorder %v508_v56, 0.0 }
 0x45f   : > { %v511_v59 = vpop.f32.mrb[6].mxu0 }
 0x460   : > { %1080 = vpow2.f32 %v517_v57  ;;  %v519_v60 = vmul.f32 1.442695, %v511_v59  ;;  %v1011_v61 = vpop.f32.mrb[7].mxu0  ;;  %vm516_vm13 = vcmp.gt.f32.partialorder %v511_v59, 0.0 }
 0x462   : > { %1082 = vpow2.f32 %v519_v60 }
 0x465   : > { %v674_v62 = vpop.f32.mrb[8].mxu0 }
 0x466   : > { %v683_v63 = vmul.f32 1.442695, %v674_v62  ;;  %v1022_v0 = vpop.f32.mrb[9].mxu0  ;;  %vm681_vm14 = vcmp.gt.f32.partialorder %v674_v62, 0.0 }
 0x467   : > { %v677_v2 = vpop.f32.mrb[10].mxu0 }
 0x468   : > { %1084 = vpow2.f32 %v683_v63  ;;  %v685_v3 = vmul.f32 1.442695, %v677_v2  ;;  %v1023_v4 = vpop.f32.mrb[11].mxu0  ;;  %vm682_vm15 = vcmp.gt.f32.partialorder %v677_v2, 0.0 }
 0x46a   : > { %v1081_v5 = vpop.eup %1080  ;;  %1086 = vpow2.f32 %v685_v3 }
 0x46b   : > { %v957_v6 = vadd.f32 -1.0, %v1081_v5 }
 0x46c   : > { %v1083_v9 = vpop.eup %1082 }
 0x46d   : > { %v958_v12 = vadd.f32 -1.0, %v1083_v9  ;;  %v523_v13 = vsel %vm515_vm12, %v508_v56, %v957_v6 }
 0x46f   : > { %v524_v14 = vsel %vm516_vm13, %v511_v59, %v958_v12 }
 0x470   : > { %v525_v16 = vpack.c.bf16 %v524_v14, %v523_v13 }
 0x472   : > { %v1085_v17 = vpop.eup %1084  ;;  %1015 = vmatmul.mubr.msk.bf16.vlgmr.msra.gmra.mrb[4].mxu1 %vm447_vm9, %v525_v16 }
 0x473   : > { %v961_v19 = vadd.f32 -1.0, %v1085_v17  ;;  %1025 = vmatpush3.bf16.msra.mxu1 %v394_v15  ;;  %1026 = vmatprep.mubr.msk.bf16.mxu1 %vm1109_vm1, %v1108_v1 }
 0x474   : > { %v1087_v20 = vpop.eup %1086 }
 0x475   : > { %v962_v21 = vadd.f32 -1.0, %v1087_v20  ;;  %v689_v22 = vsel %vm681_vm14, %v674_v62, %v961_v19 }
 0x477   : > { %v690_v23 = vsel %vm682_vm15, %v677_v2, %v962_v21 }
 0x478   : > { %v691_v24 = vpack.c.bf16 %v690_v23, %v689_v22 }
 0x47e   : > { %1027 = vmatmul.mubr.msk.bf16.vlgmr.msra.gmra.mrb[4].mxu1 %vm447_vm9, %v691_v24 }
 0x551   : > { %v729_v26 = vpop.f32.mrb[4].mxu1 }
 0x552   : > { %v1028_v27 = vpop.f32.mrb[5].mxu1  ;;  %v756_v28 = vmul.f32 %v754_v25, %v729_v26  ;;  %v745_v1 = vmul.f32 %v964_v55, %v729_v26 }
 0x553   : > { %v732_v29 = vpop.f32.mrb[6].mxu1 }
 0x554   : > { %v764_v30 = vpack.c.bf16 %v732_v29, %v729_v26  ;;  %v1029_v31 = vpop.f32.mrb[7].mxu1  ;;  %v758_v32 = vsel %vm288_vm2, %v756_v28, 0.0  ;;  %v757_v33 = vmul.f32 %v754_v25, %v732_v29  ;;  %v746_v37 = vmul.f32 %v964_v55, %v732_v29 }
 0x555   : > { %759 = vadd.xlane.f32.xlu1 %v758_v32  ;;  %v747_v38 = vsel %vm288_vm2, %v745_v1, 0.0 }
 0x556   : > { %1031 = vmatpush3.bf16.msra.mxu0 %v764_v30  ;;  %v761_v34 = vsel %vm288_vm2, %v757_v33, 0.0  ;;  %v750_v39 = vsel %vm288_vm2, %v746_v37, 0.0 }
 0x557   : > { %762 = vadd.xlane.f32.xlu0 %v761_v34 }
 0x559   : > { %748 = vadd.xlane.f32.xlu1 %v747_v38 }
 0x55b   : > { %751 = vadd.xlane.f32.xlu0 %v750_v39 }
 0x5e2   : > { %v760_v40 = vpop.xlane.xlu1 %759 }
 0x5e3   : > { %v770_v42 = vrot.slane %v760_v40, %v1212_v35 }
 0x5e4   : > { %v763_v41 = vpop.xlane.xlu0 %762 }
 0x5e5   : > { %v774_v43 = vrot.slane %v763_v41, %v1214_v36 }
 0x5e6   : > { %v749_v44 = vpop.xlane.xlu1 %748 }
 0x5e7   : > { %v775_v45 = vsel %vm422_vm4, %v774_v43, %v770_v42 }
 0x5e8   : > { %v783_v46 = vadd.f32 %v775_v45, %v749_v44  ;;  %v752_v18 = vpop.xlane.xlu0 %751 }
 0x5e9   : > { %v784_v47 = vadd.f32 %v775_v45, %v752_v18 }
 0x5ea   : > { %vm785_vm0 = vcmp.gt.f32.partialorder %v783_v46, 0.0  ;;  %v787_v48 = vmul.f32 0.2, %v783_v46 }
 0x5eb   : > { %vm786_vm1 = vcmp.gt.f32.partialorder %v784_v47, 0.0  ;;  %v788_v50 = vmul.f32 0.2, %v784_v47 }
 0x5ec   : > { %v789_v51 = vsel %vm785_vm0, %v783_v46, %v787_v48 }
 0x5ed   : > { %v791_v52 = vadd.f32 %v789_v51, %v1223_v53  ;;  %v790_v54 = vsel %vm786_vm1, %v784_v47, %v788_v50 }
 0x5ee   : > { %v792_v55 = vadd.f32 %v790_v54, %v1219_v49 }
 0x5ef   : > { %v793_v35 = vsel %vm447_vm9, %v791_v52, -inf }
 0x5f0   : > { %794 = vmax.xlane.f32.xlu1 %v793_v35  ;;  %v796_v36 = vsel %vm447_vm9, %v792_v55, -inf }
 0x5f1   : > { %797 = vmax.xlane.f32.xlu0 %v796_v36 }
 0x67d   : > { %v795_v56 = vpop.xlane.xlu1 %794 }
 0x67e   : > { %v799_v57 = vsub.f32 %v791_v52, %v795_v56  ;;  %v798_v58 = vpop.xlane.xlu0 %797 }
 0x67f   : > { %v800_v59 = vsub.f32 %v792_v55, %v798_v58 }
 0x680   : > { %v801_v60 = vmul.f32 1.442695, %v799_v57 }
 0x681   : > { %v803_v61 = vmul.f32 1.442695, %v800_v59 }
 0x682   : > { %1088 = vpow2.f32 %v801_v60 }
 0x683   : > { %1090 = vpow2.f32 %v803_v61 }
 0x68c   : > { %v1089_v62 = vpop.eup %1088 }
 0x68d   : > { %v1091_v63 = vpop.eup %1090  ;;  %v805_v53 = vsel %vm447_vm9, %v1089_v62, 0.0 }
 0x68e   : > { %806 = vadd.xlane.f32.xlu1 %v805_v53  ;;  %v808_v49 = vsel %vm447_vm9, %v1091_v63, 0.0 }
 0x68f   : > { %809 = vadd.xlane.f32.xlu0 %v808_v49 }
 0x71b   : > { %v807_v0 = vpop.xlane.xlu1 %806 }
 0x71c   : > { %1092 = vrcp.f32 %v807_v0  ;;  %v810_v2 = vpop.xlane.xlu0 %809 }
 0x71d   : > { %1094 = vrcp.f32 %v810_v2 }
 0x726   : > { %v1093_v3 = vpop.eup %1092 }
 0x727   : > { %v1095_v4 = vpop.eup %1094  ;;  %v813_v5 = vmul.f32 %v1093_v3, %v1089_v62 }
 0x728   : > { %v814_v6 = vmul.f32 %v1095_v4, %v1091_v63 }
 0x72a   : > { %v815_v9 = vpack.c.bf16 %v814_v6, %v813_v5 }
 0x72c   : > { %1033 = vmatmul.mubr.msk.bf16.vlgmr.msra.gmra.mrb[12].mxu0 %vm447_vm9, %v815_v9 }
 0x7ff   : > { %v853_v10 = vpop.f32.mrb[12].mxu0 }
 0x800   : > { %v862_v11 = vmul.f32 1.442695, %v853_v10  ;;  %v1034_v12 = vpop.f32.mrb[13].mxu0  ;;  %vm860_vm3 = vcmp.gt.f32.partialorder %v853_v10, 0.0 }
 0x801   : > { %v856_v13 = vpop.f32.mrb[14].mxu0 }
 0x802   : > { %1096 = vpow2.f32 %v862_v11  ;;  %v864_v14 = vmul.f32 1.442695, %v856_v13  ;;  %v1035_v15 = vpop.f32.mrb[15].mxu0  ;;  %vm861_vm4 = vcmp.gt.f32.partialorder %v856_v13, 0.0 }
 0x804   : > { %1098 = vpow2.f32 %v864_v14 }
 0x80c   : > { %v1097_v16 = vpop.eup %1096 }
 0x80d   : > { %v966_v17 = vadd.f32 -1.0, %v1097_v16 }
 0x80e   : > { %v1099_v19 = vpop.eup %1098 }
 0x80f   : > { %v868_v20 = vsel %vm860_vm3, %v853_v10, %v966_v17  ;;  %v967_v21 = vadd.f32 -1.0, %v1099_v19 }
 0x810   : > { %v872_v22 = vadd.f32 %v868_v20, %v1185_v7 }
 0x811   : > { %v869_v23 = vsel %vm861_vm4, %v856_v13, %v967_v21 }
 0x812   : > { %874 = vst.msk [vmem:[%s271_s10] sm:$0xff] %vm288_vm2, %v872_v22  ;;  %v873_v24 = vadd.f32 %v869_v23, %v1187_v8 }
 0x814   : > { %875 = vst.msk [vmem:[%s271_s10 + $0x8] sm:$0xff] %vm288_vm2, %v873_v24 }
 0x815 PF: > { %s16_s21 = sadd.s32 1, %s1106_s21  }
 0x816   : > { %p13_p4 = scmp.ge.s32.totalorder %s16_s21, 4  }
 0x818   :  { %15 = sbr.rel (!%p13_p4) target bundleno = 1 (0x1), region = 77 }

</bundles_post_ra>
